<compile_context>
chip_gen: v6e
topology: v6e:2x2x1
jax: 0.10.0
libtpu: 0.0.40
codegen_flags: <defaults>
</compile_context>

<pallas_src>
import numpy as np

import jax
import jax.numpy as jnp
from jax.experimental import pallas as pl
from jax.experimental.pallas import tpu as pltpu


def make_kernel(k):
    """Host-side port of stylegan2 make_kernel (the kernel is a fixed buffer)."""
    k = np.asarray(k, dtype=np.float32)
    if k.ndim == 1:
        k = k[None, :] * k[:, None]
    k = k / k.sum()
    return k


def _build_blur_body(taps, kh, kw, h, w, ho, wo, py0, px0):
    """taps: flipped blur kernel values, row-major, as Python floats (constants)."""

    def kernel(x_ref, o_ref, xp_ref):
        # Build the zero-padded tile entirely in VMEM (no extra HBM pad pass).
        xp_ref[...] = jnp.zeros_like(xp_ref)
        xp_ref[:, py0:py0 + h, px0:px0 + w] = x_ref[...].astype(jnp.float32)

        # Depthwise correlation with the (already flipped) kernel: pure VPU FMAs.
        acc = None
        for i in range(kh):
            for j in range(kw):
                t = taps[i * kw + j]
                if t == 0.0:
                    continue
                contrib = xp_ref[:, i:i + ho, j:j + wo] * t
                acc = contrib if acc is None else acc + contrib
        if acc is None:  # degenerate all-zero kernel
            acc = jnp.zeros((x_ref.shape[0], ho, wo), jnp.float32)
        o_ref[...] = acc.astype(o_ref.dtype)

    return kernel


def blur_forward(x, kernel, pad, upsample_factor=1, *, max_block_bytes=4 * 1024 * 1024):
    """Pallas implementation of Blur(kernel, pad, upsample_factor).forward(x).

    x: (N, C, H, W); kernel: 1D or 2D tap list/array (as passed to Blur.__init__);
    pad: (pad0, pad1) applied to both H and W. Returns (N, C, H_out, W_out).
    """
    k2 = make_kernel(kernel)
    if upsample_factor > 1:
        k2 = k2 * (upsample_factor ** 2)
    kh, kw = k2.shape
    p0, p1 = int(pad[0]), int(pad[1])

    n, c, h, w = x.shape

    # Negative pads crop the input (rare path in Blur; handled in the wrapper).
    crop0, crop1 = max(-p0, 0), max(-p1, 0)
    if crop0 or crop1:
        x = x[:, :, crop0:h - crop1, crop0:w - crop1]
        h, w = x.shape[2], x.shape[3]
    py0 = px0 = max(p0, 0)
    py1 = px1 = max(p1, 0)

    hp, wp = h + py0 + py1, w + px0 + px1
    ho, wo = hp - kh + 1, wp - kw + 1
    assert ho > 0 and wo > 0, "Blur output size must be positive"

    # F.conv2d in upfirdn2d uses the flipped kernel; bake taps as constants.
    taps = [float(v) for v in np.flip(k2).reshape(-1)]

    nc = n * c
    x_flat = x.reshape(nc, h, w)  # leading-dim reshape only (no transpose)

    # Pick TB planes per grid step: double-buffered in/out tiles + padded scratch
    # must fit comfortably in VMEM (v7x: 64 MiB total); keep grid >= 2 when
    # possible so pipelining / both TensorCores get work.
    itemsize = np.dtype(x.dtype).itemsize
    per_plane = 2 * (h * w + ho * wo) * itemsize + hp * wp * 4
    tb = max(1, min(nc, max_block_bytes // max(per_plane, 1)))
    if nc >= 2:
        tb = min(tb, max(1, nc // 2))
    while nc % tb:
        tb -= 1
    grid = (nc // tb,)

    body = _build_blur_body(taps, kh, kw, h, w, ho, wo, py0, px0)

    out_flat = pl.pallas_call(
        body,
        out_shape=jax.ShapeDtypeStruct((nc, ho, wo), x.dtype),
        grid_spec=pltpu.PrefetchScalarGridSpec(
            num_scalar_prefetch=0,
            grid=grid,
            in_specs=[pl.BlockSpec((tb, h, w), lambda i: (i, 0, 0))],
            out_specs=pl.BlockSpec((tb, ho, wo), lambda i: (i, 0, 0)),
            scratch_shapes=[pltpu.VMEM((tb, hp, wp), jnp.float32)],
        ),
        compiler_params=pltpu.CompilerParams(
            dimension_semantics=("parallel",)),
        cost_estimate=pl.CostEstimate(
            flops=2 * kh * kw * nc * ho * wo,
            transcendentals=0,
            bytes_accessed=(nc * h * w + nc * ho * wo) * itemsize),
    )(x_flat)

    return out_flat.reshape(n, c, ho, wo)


if __name__ == "__main__":
    key = jax.random.PRNGKey(0)
    batch, ch, spatial = 2, 4, 16
    x = jax.random.normal(key, (batch, ch, spatial, spatial), jnp.float32)

    blur_taps = [1, 3, 3, 1]      # standard StyleGAN2 blur kernel
    pad = (2, 1)                  # typical Blur pad -> same spatial size here

    out = blur_forward(x, blur_taps, pad)
    out = jax.block_until_ready(out)

    # Plain-JAX reference: upfirdn2d with up=1, down=1 == zero-pad + depthwise
    # correlation with the flipped normalized kernel.
    k2 = make_kernel(blur_taps)
    kf = jnp.asarray(np.flip(k2))
    xp = jnp.pad(x, ((0, 0), (0, 0), (pad[0], pad[1]), (pad[0], pad[1])))
    w_ref = jnp.broadcast_to(kf[None, None], (ch, 1, k2.shape[0], k2.shape[1]))
    ref = jax.lax.conv_general_dilated(
        xp, w_ref, window_strides=(1, 1), padding="VALID",
        dimension_numbers=("NCHW", "OIHW", "NCHW"), feature_group_count=ch)

    assert out.shape == ref.shape == (batch, ch, spatial, spatial)
    assert jnp.allclose(out, ref, atol=1e-5, rtol=1e-5)

    print("KERNEL_OK")
</pallas_src>

<mosaic_0001>
module attributes {stable_mosaic.version = 11 : i64} {
  func.func @kernel(%arg0: i32, %arg1: memref<4x16x16xf32, #tpu.memory_space<vmem>>, %arg2: memref<4x16x16xf32, #tpu.memory_space<vmem>>, %arg3: memref<4x19x19xf32, #tpu.memory_space<vmem>>) attributes {dimension_semantics = [#tpu.dimension_semantics<parallel>], iteration_bounds = array<i64: 2>, scalar_prefetch = 0 : i64, scratch_operands = 1 : i64, tpu.core_type = #tpu.core_type<tc>, window_params = [{transform_indices = @transform_0, window_bounds = array<i64: 4, 16, 16>}, {transform_indices = @transform_1, window_bounds = array<i64: 4, 16, 16>}]} {
    %cst = arith.constant 0.000000e+00 : f32
    %0 = vector.broadcast %cst : f32 to vector<4x19x19xf32>
    %c0 = arith.constant 0 : index
    %c0_0 = arith.constant 0 : index
    %c0_1 = arith.constant 0 : index
    %1 = vector.load %arg3[%c0, %c0_0, %c0_1] : memref<4x19x19xf32, #tpu.memory_space<vmem>>, vector<4x19x19xf32>
    tpu.vector_store %arg3[%c0, %c0_0, %c0_1], %0 {strides = array<i32>} : memref<4x19x19xf32, #tpu.memory_space<vmem>>, vector<4x19x19xf32>,
    %c0_2 = arith.constant 0 : index
    %c0_3 = arith.constant 0 : index
    %c0_4 = arith.constant 0 : index
    %2 = vector.load %arg1[%c0_2, %c0_3, %c0_4] : memref<4x16x16xf32, #tpu.memory_space<vmem>>, vector<4x16x16xf32>
    %c0_5 = arith.constant 0 : index
    %c2 = arith.constant 2 : index
    %c2_6 = arith.constant 2 : index
    %3 = vector.load %arg3[%c0_5, %c2, %c2_6] : memref<4x19x19xf32, #tpu.memory_space<vmem>>, vector<4x16x16xf32>
    tpu.vector_store %arg3[%c0_5, %c2, %c2_6], %2 {strides = array<i32>} : memref<4x19x19xf32, #tpu.memory_space<vmem>>, vector<4x16x16xf32>,
    %c0_7 = arith.constant 0 : index
    %c0_8 = arith.constant 0 : index
    %c0_9 = arith.constant 0 : index
    %4 = vector.load %arg3[%c0_7, %c0_8, %c0_9] : memref<4x19x19xf32, #tpu.memory_space<vmem>>, vector<4x16x16xf32>
    %cst_10 = arith.constant 1.562500e-02 : f32
    %5 = vector.broadcast %cst_10 : f32 to vector<4x16x16xf32>
    %6 = arith.mulf %4, %5 : vector<4x16x16xf32>
    %c0_11 = arith.constant 0 : index
    %c0_12 = arith.constant 0 : index
    %c1 = arith.constant 1 : index
    %7 = vector.load %arg3[%c0_11, %c0_12, %c1] : memref<4x19x19xf32, #tpu.memory_space<vmem>>, vector<4x16x16xf32>
    %cst_13 = arith.constant 4.687500e-02 : f32
    %8 = vector.broadcast %cst_13 : f32 to vector<4x16x16xf32>
    %9 = arith.mulf %7, %8 : vector<4x16x16xf32>
    %10 = arith.addf %6, %9 : vector<4x16x16xf32>
    %c0_14 = arith.constant 0 : index
    %c0_15 = arith.constant 0 : index
    %c2_16 = arith.constant 2 : index
    %11 = vector.load %arg3[%c0_14, %c0_15, %c2_16] : memref<4x19x19xf32, #tpu.memory_space<vmem>>, vector<4x16x16xf32>
    %cst_17 = arith.constant 4.687500e-02 : f32
    %12 = vector.broadcast %cst_17 : f32 to vector<4x16x16xf32>
    %13 = arith.mulf %11, %12 : vector<4x16x16xf32>
    %14 = arith.addf %10, %13 : vector<4x16x16xf32>
    %c0_18 = arith.constant 0 : index
    %c0_19 = arith.constant 0 : index
    %c3 = arith.constant 3 : index
    %15 = vector.load %arg3[%c0_18, %c0_19, %c3] : memref<4x19x19xf32, #tpu.memory_space<vmem>>, vector<4x16x16xf32>
    %cst_20 = arith.constant 1.562500e-02 : f32
    %16 = vector.broadcast %cst_20 : f32 to vector<4x16x16xf32>
    %17 = arith.mulf %15, %16 : vector<4x16x16xf32>
    %18 = arith.addf %14, %17 : vector<4x16x16xf32>
    %c0_21 = arith.constant 0 : index
    %c1_22 = arith.constant 1 : index
    %c0_23 = arith.constant 0 : index
    %19 = vector.load %arg3[%c0_21, %c1_22, %c0_23] : memref<4x19x19xf32, #tpu.memory_space<vmem>>, vector<4x16x16xf32>
    %cst_24 = arith.constant 4.687500e-02 : f32
    %20 = vector.broadcast %cst_24 : f32 to vector<4x16x16xf32>
    %21 = arith.mulf %19, %20 : vector<4x16x16xf32>
    %22 = arith.addf %18, %21 : vector<4x16x16xf32>
    %c0_25 = arith.constant 0 : index
    %c1_26 = arith.constant 1 : index
    %c1_27 = arith.constant 1 : index
    %23 = vector.load %arg3[%c0_25, %c1_26, %c1_27] : memref<4x19x19xf32, #tpu.memory_space<vmem>>, vector<4x16x16xf32>
    %cst_28 = arith.constant 1.406250e-01 : f32
    %24 = vector.broadcast %cst_28 : f32 to vector<4x16x16xf32>
    %25 = arith.mulf %23, %24 : vector<4x16x16xf32>
    %26 = arith.addf %22, %25 : vector<4x16x16xf32>
    %c0_29 = arith.constant 0 : index
    %c1_30 = arith.constant 1 : index
    %c2_31 = arith.constant 2 : index
    %27 = vector.load %arg3[%c0_29, %c1_30, %c2_31] : memref<4x19x19xf32, #tpu.memory_space<vmem>>, vector<4x16x16xf32>
    %cst_32 = arith.constant 1.406250e-01 : f32
    %28 = vector.broadcast %cst_32 : f32 to vector<4x16x16xf32>
    %29 = arith.mulf %27, %28 : vector<4x16x16xf32>
    %30 = arith.addf %26, %29 : vector<4x16x16xf32>
    %c0_33 = arith.constant 0 : index
    %c1_34 = arith.constant 1 : index
    %c3_35 = arith.constant 3 : index
    %31 = vector.load %arg3[%c0_33, %c1_34, %c3_35] : memref<4x19x19xf32, #tpu.memory_space<vmem>>, vector<4x16x16xf32>
    %cst_36 = arith.constant 4.687500e-02 : f32
    %32 = vector.broadcast %cst_36 : f32 to vector<4x16x16xf32>
    %33 = arith.mulf %31, %32 : vector<4x16x16xf32>
    %34 = arith.addf %30, %33 : vector<4x16x16xf32>
    %c0_37 = arith.constant 0 : index
    %c2_38 = arith.constant 2 : index
    %c0_39 = arith.constant 0 : index
    %35 = vector.load %arg3[%c0_37, %c2_38, %c0_39] : memref<4x19x19xf32, #tpu.memory_space<vmem>>, vector<4x16x16xf32>
    %cst_40 = arith.constant 4.687500e-02 : f32
    %36 = vector.broadcast %cst_40 : f32 to vector<4x16x16xf32>
    %37 = arith.mulf %35, %36 : vector<4x16x16xf32>
    %38 = arith.addf %34, %37 : vector<4x16x16xf32>
    %c0_41 = arith.constant 0 : index
    %c2_42 = arith.constant 2 : index
    %c1_43 = arith.constant 1 : index
    %39 = vector.load %arg3[%c0_41, %c2_42, %c1_43] : memref<4x19x19xf32, #tpu.memory_space<vmem>>, vector<4x16x16xf32>
    %cst_44 = arith.constant 1.406250e-01 : f32
    %40 = vector.broadcast %cst_44 : f32 to vector<4x16x16xf32>
    %41 = arith.mulf %39, %40 : vector<4x16x16xf32>
    %42 = arith.addf %38, %41 : vector<4x16x16xf32>
    %c0_45 = arith.constant 0 : index
    %c2_46 = arith.constant 2 : index
    %c2_47 = arith.constant 2 : index
    %43 = vector.load %arg3[%c0_45, %c2_46, %c2_47] : memref<4x19x19xf32, #tpu.memory_space<vmem>>, vector<4x16x16xf32>
    %cst_48 = arith.constant 1.406250e-01 : f32
    %44 = vector.broadcast %cst_48 : f32 to vector<4x16x16xf32>
    %45 = arith.mulf %43, %44 : vector<4x16x16xf32>
    %46 = arith.addf %42, %45 : vector<4x16x16xf32>
    %c0_49 = arith.constant 0 : index
    %c2_50 = arith.constant 2 : index
    %c3_51 = arith.constant 3 : index
    %47 = vector.load %arg3[%c0_49, %c2_50, %c3_51] : memref<4x19x19xf32, #tpu.memory_space<vmem>>, vector<4x16x16xf32>
    %cst_52 = arith.constant 4.687500e-02 : f32
    %48 = vector.broadcast %cst_52 : f32 to vector<4x16x16xf32>
    %49 = arith.mulf %47, %48 : vector<4x16x16xf32>
    %50 = arith.addf %46, %49 : vector<4x16x16xf32>
    %c0_53 = arith.constant 0 : index
    %c3_54 = arith.constant 3 : index
    %c0_55 = arith.constant 0 : index
    %51 = vector.load %arg3[%c0_53, %c3_54, %c0_55] : memref<4x19x19xf32, #tpu.memory_space<vmem>>, vector<4x16x16xf32>
    %cst_56 = arith.constant 1.562500e-02 : f32
    %52 = vector.broadcast %cst_56 : f32 to vector<4x16x16xf32>
    %53 = arith.mulf %51, %52 : vector<4x16x16xf32>
    %54 = arith.addf %50, %53 : vector<4x16x16xf32>
    %c0_57 = arith.constant 0 : index
    %c3_58 = arith.constant 3 : index
    %c1_59 = arith.constant 1 : index
    %55 = vector.load %arg3[%c0_57, %c3_58, %c1_59] : memref<4x19x19xf32, #tpu.memory_space<vmem>>, vector<4x16x16xf32>
    %cst_60 = arith.constant 4.687500e-02 : f32
    %56 = vector.broadcast %cst_60 : f32 to vector<4x16x16xf32>
    %57 = arith.mulf %55, %56 : vector<4x16x16xf32>
    %58 = arith.addf %54, %57 : vector<4x16x16xf32>
    %c0_61 = arith.constant 0 : index
    %c3_62 = arith.constant 3 : index
    %c2_63 = arith.constant 2 : index
    %59 = vector.load %arg3[%c0_61, %c3_62, %c2_63] : memref<4x19x19xf32, #tpu.memory_space<vmem>>, vector<4x16x16xf32>
    %cst_64 = arith.constant 4.687500e-02 : f32
    %60 = vector.broadcast %cst_64 : f32 to vector<4x16x16xf32>
    %61 = arith.mulf %59, %60 : vector<4x16x16xf32>
    %62 = arith.addf %58, %61 : vector<4x16x16xf32>
    %c0_65 = arith.constant 0 : index
    %c3_66 = arith.constant 3 : index
    %c3_67 = arith.constant 3 : index
    %63 = vector.load %arg3[%c0_65, %c3_66, %c3_67] : memref<4x19x19xf32, #tpu.memory_space<vmem>>, vector<4x16x16xf32>
    %cst_68 = arith.constant 1.562500e-02 : f32
    %64 = vector.broadcast %cst_68 : f32 to vector<4x16x16xf32>
    %65 = arith.mulf %63, %64 : vector<4x16x16xf32>
    %66 = arith.addf %62, %65 : vector<4x16x16xf32>
    %c0_69 = arith.constant 0 : index
    %c0_70 = arith.constant 0 : index
    %c0_71 = arith.constant 0 : index
    %67 = vector.load %arg2[%c0_69, %c0_70, %c0_71] : memref<4x16x16xf32, #tpu.memory_space<vmem>>, vector<4x16x16xf32>
    tpu.vector_store %arg2[%c0_69, %c0_70, %c0_71], %66 {strides = array<i32>} : memref<4x16x16xf32, #tpu.memory_space<vmem>>, vector<4x16x16xf32>,
    return
  }
  func.func @transform_0(%arg0: i32) -> (i32, i32, i32) {
    %c0_i32 = arith.constant 0 : i32
    %c0_i32_0 = arith.constant 0 : i32
    %c0_i32_1 = arith.constant 0 : i32
    return %arg0, %c0_i32, %c0_i32_0 : i32, i32, i32
  }
  func.func @transform_1(%arg0: i32) -> (i32, i32, i32) {
    %c0_i32 = arith.constant 0 : i32
    %c0_i32_0 = arith.constant 0 : i32
    %c0_i32_1 = arith.constant 0 : i32
    return %arg0, %c0_i32, %c0_i32_0 : i32, i32, i32
  }
}

</mosaic_0001>

<bundles_post_ra>
// kernel: tpu_custom_call.1
= control target key start
LH: loop header
LB: loop body
LE: loop exit
PB: predicated region body
PF: predicated region fallthrough
CT: control target
= control target key end

     0   :  { %6 = vsyncpa [#allocation4], 0  ;;  %s1510_s0 = inlined_call_operand.hbm [shape: f32[8,16,16], index: 0, kind: input, shape index: {}]   ;;  %s1511_s1 = inlined_call_operand.hbm [shape: f32[8,16,16], index: 1, kind: output, shape index: {}]  }
   0x1   :  { %8 = vsyncpa [#allocation4 + $0x1], 0 }
   0x2   :  { %9 = vsyncpa [#allocation5], 0 }
   0x3   :  { %11 = vsyncpa [#allocation5 + $0x1], 0  ;;  %s1056_s6 = smov 0   ;;  %s1058_s7 = smov 0  }
   0x4   :  { %s1060_s8 = smov 0   ;;  %s1062_s9 = smov 0  }
   0x5 LB: > { %s1077_s10 = sadd.s32 4294967295, %s1033_s9   ;;  %s866_s11 = sadd.s32 4294967294, %s1033_s9   ;;  %s1033_s9 = sphi %s1062_s9, %s1526_s9   ;;  %s1029_s8 = sphi %s1060_s8, %s1525_s8   ;;  %s1025_s7 = sphi %s1058_s7, %s1524_s7   ;;  %s1021_s6 = sphi %s1056_s6, %s1523_s6  }
   0x6   : > { %s1081_s12 = sadd.s32 1, %s1033_s9   ;;  %s24_s13 = sadd.s32 1, %s1029_s8 }
   0x7   : > { %s21_s14 = ssub.s32 %s1033_s9, %s1081_s12  ;;  %p31_p0 = scmp.ne.s32.totalorder %s1029_s8, %s1025_s7 }
   0x8   : > { %p22_p1 = scmp.eq.s32.totalorder %s21_s14, 0  ;;  %p32_p2 = scmp.eq.s32.totalorder %s1033_s9, 0 }
   0x9   : > { %p37_p3 = scmp.ne.s32.totalorder %s1025_s7, %s1021_s6  ;;  %p38_p4 = scmp.eq.s32.totalorder %s1077_s10, 0 }
   0xa   : > { %s1093_s15 = scalar_select %p22_p1, %s1029_s8, %s24_s13  }
   0xb   : > { %p1095_p5 = por %p32_p2, %p31_p0  ;;  %p1099_p6 = por %p38_p4, %p37_p3 }
   0xc   : > { %p61_p7 = scmp.eq.s32.totalorder %s1077_s10, 1  ;;  %p67_p8 = scmp.eq.s32.totalorder %s866_s11, 1 }
   0xd   : > { %s1515_s17 = scalar_select %p1099_p6, 1, 0 }
   0xe   : > { %p898_p10 = scmp.lt.s32.totalorder %s1033_s9, 2  ;;  %p1106_p11 = por %p61_p7, %p31_p0 }
   0xf   : > { %p1110_p12 = por %p67_p8, %p37_p3  ;;  %s87_s20 = sand.u32 1, %s1029_s8  }
  0x10   : > { %s1516_s18 = scalar_select %p1106_p11, 1, 0 }
  0x11   : > { %s1517_s19 = scalar_select %p1110_p12, 1, 0 }
  0x12   : > { %s883_s21 = sshll.u32 %s1033_s9, 10  ;;  %s869_s22 = sshll.u32 %s87_s20, 6 }
  0x13   : > { %s1119_s25 = scalar_lea.hbm %s1510_s0, %s883_s21  ;;  %s91_s26 = scalar_lea.vmem [#allocation3], %s869_s22 }
  0x14   : > { %s99_s27 = sshll.u32 %s91_s26, 4  ;;  %p1123_p13 = pnand %p898_p10, %p1095_p5  ;;  %s1127_s27 = int_to_ptr.vmem [resolvable:$true] %s99_s27 }
  0x15   : > { %s1129_s29 = scalar_lea.sflag [#allocation4], %s87_s20  ;;  %s941_s30 = scalar_lea.hbm %s1119_s25, 1024 }
  0x16   : > { %p942_p0 = scmp.ne.s32.totalorder %s1119_s25, %s941_s30  ;;  %p943_p1 = pneg %p1123_p13 }
  0x17   : > { %s946_s4 = scalar_lea.hbm %s1510_s0, 2048  ;;  %p947_p4 = scmp.lt.s32.totalorder %s1119_s25, %s1510_s0 }
  0x18   : > { %p944_p2 = pnand %p943_p1, %p942_p0  ;;  %p948_p5 = scmp.lt.s32.totalorder %s946_s4, %s941_s30 }
  0x1a   : > { %p945_p3 = pneg %p944_p2  ;;  %p949_p7 = por %p948_p5, %p947_p4 }
  0x1c   : > { %p950_p8 = pnand %p949_p7, %p945_p3 }
  0x1e   : > { %953 = shalt.err (!%p950_p8)
}
  0x1f   : > { %s954_s13 = scalar_lea.vmem %s1127_s27, 1024  ;;  %s1035_s14 = smov [#allocation3]  }
  0x20   : > { %p955_p10 = scmp.ne.s32.totalorder %s1127_s27, %s954_s13  ;;  %s959_s16 = sshll.u32 %s1035_s14, 4  ;;  %s960_s16 = int_to_ptr.vmem [resolvable:$false] %s959_s16 }
  0x21   : > { %s961_s20 = scalar_lea.vmem %s960_s16, 2048  ;;  %p962_p2 = scmp.lt.s32.totalorder %s1127_s27, %s960_s16 }
  0x22   : > { %p957_p9 = pnand %p955_p10, %p943_p1  ;;  %p963_p12 = scmp.lt.s32.totalorder %s961_s20, %s954_s13 }
  0x24   : > { %p958_p0 = pneg %p957_p9  ;;  %p964_p11 = por %p963_p12, %p962_p2 }
  0x26   : > { %p965_p6 = pnand %p964_p11, %p958_p0 }
  0x28   : > { %968 = shalt.err (!%p965_p6)
}
  0x29   : > { %s1036_s21 = smov 128   ;;  %s1037_s22 = smov 8  }
  0x2a   : > { %893 = dma.hbm_to_vmem [thread:$0]  (!%p1123_p13), %s1119_s25, 1024, %s1127_s27, %s1129_s29, %s1036_s21, %s1036_s21, %s1037_s22  }
  0x2b   : > { %p873_p9 = scmp.ge.s32.totalorder %s1033_s9, 1  ;;  %p107_p1 = scmp.lt.s32.totalorder %s1033_s9, 3 }
  0x2d   : > { %p108_p3 = pnand %p873_p9, %p107_p1 }
  0x2e   : > { %s1153_s23 = sand.u32 (!%p108_p3), 1, %s1025_s7   ;;  %p1519_p6 = scmp.ne.s32.totalorder (!%p108_p3), %s1515_s17, 0 }
  0x2f   : > { %111 = sbr.rel (%p108_p3) target bundleno = 503 (0x1f7), region = 24  ;;  %s874_s24 = sshll.u32 (!%p108_p3), %s1153_s23, 6 }
  0x30   : > { %s114_s26 = scalar_lea.sflag (!%p108_p3), [#allocation4], %s1153_s23  ;;  %s1159_s30 = scalar_lea.vmem (!%p108_p3), [#allocation3], %s874_s24 }
  0x34   : > { %1012 = dma.done.wait (%p1519_p6), %s114_s26, 1024  }
  0x35   : > { %1014 = vsyncadd (%p1519_p6), %s114_s26, 4294966272  ;;  %vm138_vm0 = vcmask 154624   ;;  %vm141_vm1 = vcmask 149504   ;;  %v1038_v0 = vmov 0.0   ;;  %v154_v1 = vld [vmem:[%s1159_s30 + $0x10] sm:$0xff]  ;;  %v152_v2 = vld [vmem:[%s1159_s30] sm:$0xff] }
  0x36   : > { %143 = vst.msk [vmem:[#allocation2 + $0x18] sm:$0xff] %vm138_vm0, %v1038_v0  ;;  %144 = vst.msk [vmem:[#allocation2 + $0x20] sm:$0xff] %vm138_vm0, %v1038_v0  ;;  %s1039_s17 = smov 2   ;;  %v155_v3 = vld [vmem:[%s1159_s30 + $0x18] sm:$0xff]  ;;  %v153_v4 = vld [vmem:[%s1159_s30 + $0x8] sm:$0xff]  ;;  %vm192_vm2 = vcmask 146448  }
  0x37   : > { %139 = vst.msk [vmem:[#allocation2] sm:$0xff] %vm138_vm0, %v1038_v0  ;;  %140 = vst.msk [vmem:[#allocation2 + $0x8] sm:$0xff] %vm138_vm0, %v1038_v0  ;;  %172 = vrot.lane.b32.xlu1 %v154_v1, %s1039_s17  ;;  %168 = vrot.lane.b32.xlu0 %v152_v2, %s1039_s17  ;;  %v156_v5 = vld [vmem:[%s1159_s30 + $0x20] sm:$0xff]  ;;  %v157_v6 = vld [vmem:[%s1159_s30 + $0x28] sm:$0xff]  ;;  %s1040_s25 = smov 127   ;;  %s1041_s27 = smov 126  }
  0x38   : > { %146 = vst.msk [vmem:[#allocation2 + $0x30] sm:$0xff] %vm138_vm0, %v1038_v0  ;;  %147 = vst.msk [vmem:[#allocation2 + $0x38] sm:$0xff] %vm138_vm0, %v1038_v0  ;;  %v158_v7 = vld [vmem:[%s1159_s30 + $0x30] sm:$0xff]  ;;  %v159_v8 = vld [vmem:[%s1159_s30 + $0x38] sm:$0xff]  ;;  %s1042_s28 = smov 125   ;;  %vm769_vm3 = vcmask 130048  }
  0x39   : > { %149 = vst.msk [vmem:[#allocation2 + $0x48] sm:$0xff] %vm138_vm0, %v1038_v0  ;;  %150 = vst.msk [vmem:[#allocation2 + $0x50] sm:$0xff] %vm138_vm0, %v1038_v0  ;;  %s1438_s29 = scalar_lea.vmem [#allocation6], %s874_s24  ;;  %s885_s2 = sshll.u32 %s1077_s10, 10 }
  0x3a   : > { %145 = vst.msk [vmem:[#allocation2 + $0x28] sm:$0x7] %vm141_vm1, %v1038_v0  ;;  %142 = vst.msk [vmem:[#allocation2 + $0x10] sm:$0x7] %vm141_vm1, %v1038_v0  ;;  %s793_s3 = sshll.u32 %s1438_s29, 4  ;;  %s1463_s11 = scalar_lea.hbm %s1511_s1, %s885_s2  ;;  %s1465_s3 = int_to_ptr.vmem [resolvable:$true] %s793_s3 }
  0x3b   : > { %148 = vst.msk [vmem:[#allocation2 + $0x40] sm:$0x7] %vm141_vm1, %v1038_v0  ;;  %151 = vst.msk [vmem:[#allocation2 + $0x58] sm:$0x7] %vm141_vm1, %v1038_v0  ;;  %174 = vrot.lane.b32.xlu1 %v155_v3, %s1039_s17  ;;  %170 = vrot.lane.b32.xlu0 %v153_v4, %s1039_s17  ;;  %s779_s10 = scalar_lea.sflag [#allocation5], %s1153_s23  ;;  %s969_s13 = scalar_lea.vmem %s1465_s3, 1024 }
  0x3c   : > { %p970_p11 = scmp.ne.s32.totalorder %s1465_s3, %s969_s13  ;;  %p1520_p12 = scmp.ne.s32.totalorder %s1516_s18, 0 }
  0x3d   : > { %s1043_s14 = smov [#allocation6]  }
  0x3e   : > { %p971_p13 = pnand %p970_p11, %p1520_p12  ;;  %s973_s16 = sshll.u32 %s1043_s14, 4  ;;  %s974_s16 = int_to_ptr.vmem [resolvable:$false] %s973_s16 }
  0x3f   : > { %176 = vrot.lane.b32.xlu0 %v156_v5, %s1039_s17  ;;  %178 = vrot.lane.b32.xlu1 %v157_v6, %s1039_s17  ;;  %s975_s20 = scalar_lea.vmem %s974_s16, 2048  ;;  %p976_p5 = scmp.lt.s32.totalorder %s1465_s3, %s974_s16 }
  0x40   : > { %p972_p4 = pneg %p971_p13  ;;  %p977_p7 = scmp.lt.s32.totalorder %s975_s20, %s969_s13 }
  0x42   : > { %p978_p8 = por %p977_p7, %p976_p5 }
  0x43   : > { %180 = vrot.lane.b32.xlu0 %v158_v7, %s1039_s17  ;;  %182 = vrot.lane.b32.xlu1 %v159_v8, %s1039_s17 }
  0x44   : > { %p979_p10 = pnand %p978_p8, %p972_p4 }
  0xa9   : > { %v173_v9 = vpop.permute.xlu1 %172  ;;  %v169_v10 = vpop.permute.xlu0 %168 }
  0xaa   : > { %195 = vst.msk [vmem:[#allocation2 + $0x1a] sm:$0xff] %vm192_vm2, %v173_v9  ;;  %193 = vst.msk [vmem:[#allocation2 + $0x2] sm:$0xff] %vm192_vm2, %v169_v10 }
  0xad   : > { %v175_v11 = vpop.permute.xlu1 %174  ;;  %v171_v12 = vpop.permute.xlu0 %170 }
  0xae   : > { %196 = vst.msk [vmem:[#allocation2 + $0x22] sm:$0xff] %vm192_vm2, %v175_v11  ;;  %194 = vst.msk [vmem:[#allocation2 + $0xa] sm:$0xff] %vm192_vm2, %v171_v12 }
  0xb1   : > { %v177_v13 = vpop.permute.xlu0 %176  ;;  %v201_v14 = vld [vmem:[#allocation2] sm:$0xff]  ;;  %v179_v15 = vpop.permute.xlu1 %178  ;;  %v203_v16 = vld [vmem:[#allocation2 + $0x18] sm:$0xff] }
  0xb2   : > { %197 = vst.msk [vmem:[#allocation2 + $0x32] sm:$0xff] %vm192_vm2, %v177_v13  ;;  %v217_v17 = vmul.f32 0.046875, %v201_v14  ;;  %198 = vst.msk [vmem:[#allocation2 + $0x3a] sm:$0xff] %vm192_vm2, %v179_v15  ;;  %v219_v18 = vmul.f32 0.046875, %v203_v16  ;;  %v1196_v33 = vmul.f32 0.015625, %v201_v14  ;;  %v1203_v35 = vmul.f32 0.015625, %v203_v16 }
  0xb3   : > { %v337_v40 = vld [vmem:[#allocation2 + $0x1] sm:$0xff]  ;;  %v339_v44 = vld [vmem:[#allocation2 + $0x19] sm:$0xff] }
  0xb4   : > { %233 = vrot.lane.b32.xlu0 %v217_v17, %s1040_s25  ;;  %v361_v42 = vmul.f32 0.140625, %v337_v40  ;;  %v363_v46 = vmul.f32 0.140625, %v339_v44  ;;  %v1244_v57 = vmul.f32 0.046875, %v337_v40  ;;  %v1251_v59 = vmul.f32 0.046875, %v339_v44  ;;  %v481_v0 = vld [vmem:[#allocation2 + $0x2] sm:$0xff]  ;;  %v483_v4 = vld [vmem:[#allocation2 + $0x1a] sm:$0xff] }
  0xb5   : > { %v181_v19 = vpop.permute.xlu0 %180  ;;  %v202_v20 = vld [vmem:[#allocation2 + $0x8] sm:$0xff]  ;;  %v183_v21 = vpop.permute.xlu1 %182  ;;  %v204_v23 = vld [vmem:[#allocation2 + $0x20] sm:$0xff]  ;;  %v505_v2 = vmul.f32 0.140625, %v481_v0  ;;  %v507_v6 = vmul.f32 0.140625, %v483_v4 }
  0xb6   : > { %199 = vst.msk [vmem:[#allocation2 + $0x4a] sm:$0xff] %vm192_vm2, %v181_v19  ;;  %v218_v22 = vmul.f32 0.046875, %v202_v20  ;;  %200 = vst.msk [vmem:[#allocation2 + $0x52] sm:$0xff] %vm192_vm2, %v183_v21  ;;  %v220_v26 = vmul.f32 0.046875, %v204_v23  ;;  %v1201_v34 = vmul.f32 0.015625, %v202_v20  ;;  %v1209_v36 = vmul.f32 0.015625, %v204_v23 }
  0xb7   : > { %v338_v43 = vld [vmem:[#allocation2 + $0x9] sm:$0xff]  ;;  %v340_v47 = vld [vmem:[#allocation2 + $0x21] sm:$0xff] }
  0xb8   : > { %235 = vrot.lane.b32.xlu1 %v218_v22, %s1040_s25  ;;  %237 = vrot.lane.b32.xlu0 %v219_v18, %s1040_s25  ;;  %v362_v45 = vmul.f32 0.140625, %v338_v43  ;;  %v364_v49 = vmul.f32 0.140625, %v340_v47  ;;  %v1249_v58 = vmul.f32 0.046875, %v338_v43  ;;  %v1257_v60 = vmul.f32 0.046875, %v340_v47  ;;  %v482_v3 = vld [vmem:[#allocation2 + $0xa] sm:$0xff]  ;;  %v484_v7 = vld [vmem:[#allocation2 + $0x22] sm:$0xff] }
  0xb9   : > { %v205_v24 = vld [vmem:[#allocation2 + $0x30] sm:$0xff]  ;;  %v206_v25 = vld [vmem:[#allocation2 + $0x38] sm:$0xff]  ;;  %v506_v5 = vmul.f32 0.140625, %v482_v3  ;;  %v508_v9 = vmul.f32 0.140625, %v484_v7 }
  0xba   : > { %v221_v27 = vmul.f32 0.046875, %v205_v24  ;;  %v222_v28 = vmul.f32 0.046875, %v206_v25  ;;  %v1211_v37 = vmul.f32 0.015625, %v205_v24  ;;  %v1217_v38 = vmul.f32 0.015625, %v206_v25  ;;  %v341_v48 = vld [vmem:[#allocation2 + $0x31] sm:$0xff]  ;;  %v342_v51 = vld [vmem:[#allocation2 + $0x39] sm:$0xff] }
  0xbb   : > { %v365_v50 = vmul.f32 0.140625, %v341_v48  ;;  %v366_v53 = vmul.f32 0.140625, %v342_v51  ;;  %v1259_v61 = vmul.f32 0.046875, %v341_v48  ;;  %v1265_v62 = vmul.f32 0.046875, %v342_v51  ;;  %v485_v8 = vld [vmem:[#allocation2 + $0x32] sm:$0xff]  ;;  %v486_v11 = vld [vmem:[#allocation2 + $0x3a] sm:$0xff] }
  0xbc   : > { %239 = vrot.lane.b32.xlu1 %v220_v26, %s1040_s25  ;;  %241 = vrot.lane.b32.xlu0 %v221_v27, %s1040_s25  ;;  %v509_v10 = vmul.f32 0.140625, %v485_v8  ;;  %v510_v13 = vmul.f32 0.140625, %v486_v11  ;;  %v1292_v24 = vmul.f32 0.046875, %v481_v0  ;;  %v1310_v43 = vmul.f32 0.046875, %v485_v8 }
  0xbd   : > { %v207_v29 = vld [vmem:[#allocation2 + $0x48] sm:$0xff]  ;;  %v208_v30 = vld [vmem:[#allocation2 + $0x50] sm:$0xff]  ;;  %v1318_v48 = vmul.f32 0.046875, %v486_v11 }
  0xbe   : > { %v223_v31 = vmul.f32 0.046875, %v207_v29  ;;  %v224_v32 = vmul.f32 0.046875, %v208_v30  ;;  %v1219_v39 = vmul.f32 0.015625, %v207_v29  ;;  %v1225_v41 = vmul.f32 0.015625, %v208_v30  ;;  %v343_v52 = vld [vmem:[#allocation2 + $0x49] sm:$0xff]  ;;  %v344_v55 = vld [vmem:[#allocation2 + $0x51] sm:$0xff] }
  0xbf   : > { %v367_v54 = vmul.f32 0.140625, %v343_v52  ;;  %v368_v56 = vmul.f32 0.140625, %v344_v55  ;;  %v1267_v63 = vmul.f32 0.046875, %v343_v52  ;;  %v1273_v1 = vmul.f32 0.046875, %v344_v55  ;;  %v487_v12 = vld [vmem:[#allocation2 + $0x4a] sm:$0xff]  ;;  %v488_v15 = vld [vmem:[#allocation2 + $0x52] sm:$0xff] }
  0xc0   : > { %243 = vrot.lane.b32.xlu1 %v222_v28, %s1040_s25  ;;  %245 = vrot.lane.b32.xlu0 %v223_v31, %s1040_s25  ;;  %v511_v14 = vmul.f32 0.140625, %v487_v12  ;;  %v512_v16 = vmul.f32 0.140625, %v488_v15  ;;  %v1300_v29 = vmul.f32 0.046875, %v483_v4  ;;  %v1322_v52 = vld [vmem:[#allocation2 + $0x3] sm:$0xff]  ;;  %v1330_v55 = vmul.f32 0.046875, %v488_v15  ;;  %v1335_v4 = vld [vmem:[#allocation2 + $0x1b] sm:$0xff] }
  0xc1   : > { %v1345_v11 = vld [vmem:[#allocation2 + $0x33] sm:$0xff] }
  0xc4   : > { %247 = vrot.lane.b32.xlu1 %v224_v32, %s1040_s25  ;;  %265 = vrot.lane.b32.xlu0 %v217_v17, %s1041_s27 }
  0xc8   : > { %267 = vrot.lane.b32.xlu1 %v218_v22, %s1041_s27  ;;  %269 = vrot.lane.b32.xlu0 %v219_v18, %s1041_s27 }
  0xcc   : > { %271 = vrot.lane.b32.xlu1 %v220_v26, %s1041_s27  ;;  %273 = vrot.lane.b32.xlu0 %v221_v27, %s1041_s27 }
  0xd0   : > { %275 = vrot.lane.b32.xlu1 %v222_v28, %s1041_s27  ;;  %277 = vrot.lane.b32.xlu0 %v223_v31, %s1041_s27  ;;  %v1298_v28 = vmul.f32 0.046875, %v482_v3  ;;  %v1333_v3 = vld [vmem:[#allocation2 + $0xb] sm:$0xff] }
  0xd4   : > { %279 = vrot.lane.b32.xlu1 %v224_v32, %s1041_s27  ;;  %305 = vrot.lane.b32.xlu0 %v1196_v33, %s1042_s28 }
  0xd8   : > { %307 = vrot.lane.b32.xlu1 %v1201_v34, %s1042_s28  ;;  %309 = vrot.lane.b32.xlu0 %v1203_v35, %s1042_s28 }
  0xdc   : > { %311 = vrot.lane.b32.xlu1 %v1209_v36, %s1042_s28  ;;  %313 = vrot.lane.b32.xlu0 %v1211_v37, %s1042_s28 }
  0xe0   : > { %315 = vrot.lane.b32.xlu1 %v1217_v38, %s1042_s28  ;;  %317 = vrot.lane.b32.xlu0 %v1219_v39, %s1042_s28 }
  0xe4   : > { %319 = vrot.lane.b32.xlu1 %v1225_v41, %s1042_s28  ;;  %377 = vrot.lane.b32.xlu0 %v361_v42, %s1040_s25 }
  0xe8   : > { %379 = vrot.lane.b32.xlu1 %v362_v45, %s1040_s25  ;;  %381 = vrot.lane.b32.xlu0 %v363_v46, %s1040_s25 }
  0xec   : > { %383 = vrot.lane.b32.xlu1 %v364_v49, %s1040_s25  ;;  %385 = vrot.lane.b32.xlu0 %v365_v50, %s1040_s25 }
  0xf0   : > { %387 = vrot.lane.b32.xlu1 %v366_v53, %s1040_s25  ;;  %389 = vrot.lane.b32.xlu0 %v367_v54, %s1040_s25 }
  0xf4   : > { %391 = vrot.lane.b32.xlu1 %v368_v56, %s1040_s25  ;;  %409 = vrot.lane.b32.xlu0 %v361_v42, %s1041_s27 }
  0xf8   : > { %411 = vrot.lane.b32.xlu1 %v362_v45, %s1041_s27  ;;  %413 = vrot.lane.b32.xlu0 %v363_v46, %s1041_s27 }
  0xfc   : > { %415 = vrot.lane.b32.xlu1 %v364_v49, %s1041_s27  ;;  %417 = vrot.lane.b32.xlu0 %v365_v50, %s1041_s27  ;;  %v1320_v49 = vmul.f32 0.046875, %v487_v12 }
 0x100   : > { %419 = vrot.lane.b32.xlu1 %v366_v53, %s1041_s27  ;;  %421 = vrot.lane.b32.xlu0 %v367_v54, %s1041_s27 }
 0x104   : > { %423 = vrot.lane.b32.xlu1 %v368_v56, %s1041_s27  ;;  %449 = vrot.lane.b32.xlu0 %v1244_v57, %s1042_s28  ;;  %v649_v56 = vmul.f32 0.046875, %v1322_v52 }
 0x108   : > { %451 = vrot.lane.b32.xlu1 %v1249_v58, %s1042_s28  ;;  %453 = vrot.lane.b32.xlu0 %v1251_v59, %s1042_s28 }
 0x10c   : > { %455 = vrot.lane.b32.xlu1 %v1257_v60, %s1042_s28  ;;  %457 = vrot.lane.b32.xlu0 %v1259_v61, %s1042_s28 }
 0x110   : > { %459 = vrot.lane.b32.xlu1 %v1265_v62, %s1042_s28  ;;  %461 = vrot.lane.b32.xlu0 %v1267_v63, %s1042_s28 }
 0x114   : > { %463 = vrot.lane.b32.xlu1 %v1273_v1, %s1042_s28  ;;  %521 = vrot.lane.b32.xlu0 %v505_v2, %s1040_s25 }
 0x118   : > { %523 = vrot.lane.b32.xlu1 %v506_v5, %s1040_s25  ;;  %525 = vrot.lane.b32.xlu0 %v507_v6, %s1040_s25 }
 0x11c   : > { %527 = vrot.lane.b32.xlu1 %v508_v9, %s1040_s25  ;;  %529 = vrot.lane.b32.xlu0 %v509_v10, %s1040_s25 }
 0x120   : > { %531 = vrot.lane.b32.xlu1 %v510_v13, %s1040_s25  ;;  %533 = vrot.lane.b32.xlu0 %v511_v14, %s1040_s25 }
 0x124   : > { %535 = vrot.lane.b32.xlu1 %v512_v16, %s1040_s25  ;;  %553 = vrot.lane.b32.xlu0 %v505_v2, %s1041_s27 }
 0x126   : > { %v234_v17 = vpop.permute.xlu0 %233 }
 0x127   : > { %v257_v25 = vadd.f32 %v234_v17, %v1196_v33  ;;  %v1308_v33 = vmul.f32 0.046875, %v484_v7  ;;  %v651_v7 = vmul.f32 0.046875, %v1335_v4  ;;  %v1351_v17 = vld [vmem:[#allocation2 + $0x3b] sm:$0xff] }
 0x128   : > { %555 = vrot.lane.b32.xlu1 %v506_v5, %s1041_s27  ;;  %557 = vrot.lane.b32.xlu0 %v507_v6, %s1041_s27  ;;  %v650_v6 = vmul.f32 0.046875, %v1333_v3 }
 0x12a   : > { %v236_v18 = vpop.permute.xlu1 %235  ;;  %v238_v19 = vpop.permute.xlu0 %237 }
 0x12b   : > { %v258_v31 = vadd.f32 %v236_v18, %v1201_v34  ;;  %v259_v32 = vadd.f32 %v238_v19, %v1203_v35  ;;  %v1353_v18 = vld [vmem:[#allocation2 + $0x4b] sm:$0xff] }
 0x12c   : > { %559 = vrot.lane.b32.xlu1 %v508_v9, %s1041_s27  ;;  %561 = vrot.lane.b32.xlu0 %v509_v10, %s1041_s27  ;;  %v1343_v10 = vld [vmem:[#allocation2 + $0x23] sm:$0xff] }
 0x12e   : > { %v240_v20 = vpop.permute.xlu1 %239  ;;  %v242_v21 = vpop.permute.xlu0 %241 }
 0x12f   : > { %v260_v46 = vadd.f32 %v240_v20, %v1209_v36  ;;  %v261_v34 = vadd.f32 %v242_v21, %v1211_v37  ;;  %v654_v21 = vmul.f32 0.046875, %v1351_v17 }
 0x130   : > { %563 = vrot.lane.b32.xlu1 %v510_v13, %s1041_s27  ;;  %565 = vrot.lane.b32.xlu0 %v511_v14, %s1041_s27  ;;  %v653_v14 = vmul.f32 0.046875, %v1345_v11 }
 0x132   : > { %v244_v22 = vpop.permute.xlu1 %243  ;;  %v246_v23 = vpop.permute.xlu0 %245 }
 0x133   : > { %v262_v36 = vadd.f32 %v244_v22, %v1217_v38  ;;  %v263_v37 = vadd.f32 %v246_v23, %v1219_v39  ;;  %v655_v22 = vmul.f32 0.046875, %v1353_v18 }
 0x134   : > { %567 = vrot.lane.b32.xlu1 %v512_v16, %s1041_s27  ;;  %593 = vrot.lane.b32.xlu0 %v1292_v24, %s1042_s28 }
 0x136   : > { %v248_v26 = vpop.permute.xlu1 %247  ;;  %v266_v27 = vpop.permute.xlu0 %265 }
 0x137   : > { %v289_v30 = vadd.f32 %v266_v27, %v257_v25  ;;  %v264_v38 = vadd.f32 %v248_v26, %v1225_v41  ;;  %v652_v41 = vmul.f32 0.046875, %v1343_v10  ;;  %v1359_v26 = vld [vmem:[#allocation2 + $0x53] sm:$0xff] }
 0x138   : > { %595 = vrot.lane.b32.xlu1 %v1298_v28, %s1042_s28  ;;  %597 = vrot.lane.b32.xlu0 %v1300_v29, %s1042_s28 }
 0x13a   : > { %v268_v40 = vpop.permute.xlu1 %267  ;;  %v270_v42 = vpop.permute.xlu0 %269 }
 0x13b   : > { %v290_v44 = vadd.f32 %v268_v40, %v258_v31  ;;  %v291_v45 = vadd.f32 %v270_v42, %v259_v32  ;;  %v656_v31 = vmul.f32 0.046875, %v1359_v26 }
 0x13c   : > { %599 = vrot.lane.b32.xlu1 %v1308_v33, %s1042_s28  ;;  %601 = vrot.lane.b32.xlu0 %v1310_v43, %s1042_s28 }
 0x13e   : > { %v272_v47 = vpop.permute.xlu1 %271  ;;  %v274_v35 = vpop.permute.xlu0 %273 }
 0x13f   : > { %v292_v50 = vadd.f32 %v272_v47, %v260_v46  ;;  %v293_v51 = vadd.f32 %v274_v35, %v261_v34 }
 0x140   : > { %603 = vrot.lane.b32.xlu1 %v1318_v48, %s1042_s28  ;;  %605 = vrot.lane.b32.xlu0 %v1320_v49, %s1042_s28 }
 0x142   : > { %v276_v53 = vpop.permute.xlu1 %275  ;;  %v278_v54 = vpop.permute.xlu0 %277 }
 0x143   : > { %v294_v0 = vadd.f32 %v276_v53, %v262_v36  ;;  %v295_v2 = vadd.f32 %v278_v54, %v263_v37 }
 0x144   : > { %607 = vrot.lane.b32.xlu1 %v1330_v55, %s1042_s28  ;;  %665 = vrot.lane.b32.xlu0 %v649_v56, %s1040_s25 }
 0x146   : > { %v280_v39 = vpop.permute.xlu1 %279  ;;  %v306_v5 = vpop.permute.xlu0 %305 }
 0x147   : > { %v296_v8 = vadd.f32 %v280_v39, %v264_v38  ;;  %v329_v9 = vadd.f32 %v306_v5, %v289_v30  ;;  %v1380_v5 = vmul.f32 0.015625, %v1322_v52 }
 0x148   : > { %667 = vrot.lane.b32.xlu1 %v650_v6, %s1040_s25  ;;  %669 = vrot.lane.b32.xlu0 %v651_v7, %s1040_s25 }
 0x149   : > { %v353_v42 = vadd.f32 %v1244_v57, %v329_v9 }
 0x14a   : > { %v308_v12 = vpop.permute.xlu1 %307  ;;  %v310_v13 = vpop.permute.xlu0 %309 }
 0x14b   : > { %v330_v15 = vadd.f32 %v308_v12, %v290_v44  ;;  %v331_v16 = vadd.f32 %v310_v13, %v291_v45  ;;  %v1397_v12 = vmul.f32 0.015625, %v1343_v10 }
 0x14c   : > { %671 = vrot.lane.b32.xlu1 %v652_v41, %s1040_s25  ;;  %673 = vrot.lane.b32.xlu0 %v653_v14, %s1040_s25 }
 0x14d   : > { %v354_v47 = vadd.f32 %v1249_v58, %v330_v15  ;;  %v355_v35 = vadd.f32 %v1251_v59, %v331_v16  ;;  %v1410_v15 = vmul.f32 0.015625, %v1353_v18 }
 0x14e   : > { %v312_v19 = vpop.permute.xlu1 %311  ;;  %v314_v20 = vpop.permute.xlu0 %313 }
 0x14f   : > { %v332_v23 = vadd.f32 %v312_v19, %v292_v50  ;;  %v333_v25 = vadd.f32 %v314_v20, %v293_v51  ;;  %v1417_v20 = vmul.f32 0.015625, %v1359_v26 }
 0x150   : > { %675 = vrot.lane.b32.xlu1 %v654_v21, %s1040_s25  ;;  %677 = vrot.lane.b32.xlu0 %v655_v22, %s1040_s25 }
 0x151   : > { %v356_v57 = vadd.f32 %v1257_v60, %v332_v23  ;;  %v357_v53 = vadd.f32 %v1259_v61, %v333_v25 }
 0x152   : > { %v316_v27 = vpop.permute.xlu1 %315  ;;  %v318_v30 = vpop.permute.xlu0 %317 }
 0x153   : > { %v334_v32 = vadd.f32 %v316_v27, %v294_v0  ;;  %v335_v40 = vadd.f32 %v318_v30, %v295_v2 }
 0x154   : > { %679 = vrot.lane.b32.xlu1 %v656_v31, %s1040_s25  ;;  %697 = vrot.lane.b32.xlu0 %v649_v56, %s1041_s27 }
 0x155   : > { %v358_v58 = vadd.f32 %v1265_v62, %v334_v32  ;;  %v359_v59 = vadd.f32 %v1267_v63, %v335_v40  ;;  %v1390_v63 = vmul.f32 0.015625, %v1333_v3  ;;  %v1407_v3 = vmul.f32 0.015625, %v1351_v17 }
 0x156   : > { %v320_v44 = vpop.permute.xlu1 %319  ;;  %v378_v45 = vpop.permute.xlu0 %377 }
 0x157   : > { %v336_v46 = vadd.f32 %v320_v44, %v296_v8  ;;  %v401_v34 = vadd.f32 %v378_v45, %v353_v42 }
 0x158   : > { %699 = vrot.lane.b32.xlu1 %v650_v6, %s1041_s27  ;;  %701 = vrot.lane.b32.xlu0 %v651_v7, %s1041_s27  ;;  %v1387_v7 = vmul.f32 0.015625, %v1335_v4 }
 0x159   : > { %v360_v61 = vadd.f32 %v1273_v1, %v336_v46  ;;  %v1400_v1 = vmul.f32 0.015625, %v1345_v11 }
 0x15a   : > { %v380_v50 = vpop.permute.xlu1 %379  ;;  %v382_v51 = vpop.permute.xlu0 %381 }
 0x15b   : > { %v402_v36 = vadd.f32 %v380_v50, %v354_v47  ;;  %v403_v37 = vadd.f32 %v382_v51, %v355_v35 }
 0x15c   : > { %703 = vrot.lane.b32.xlu1 %v652_v41, %s1041_s27  ;;  %705 = vrot.lane.b32.xlu0 %v653_v14, %s1041_s27 }
 0x15e   : > { %v384_v54 = vpop.permute.xlu1 %383  ;;  %v386_v56 = vpop.permute.xlu0 %385 }
 0x15f   : > { %v404_v0 = vadd.f32 %v384_v54, %v356_v57  ;;  %v405_v2 = vadd.f32 %v386_v56, %v357_v53 }
 0x160   : > { %707 = vrot.lane.b32.xlu1 %v654_v21, %s1041_s27  ;;  %709 = vrot.lane.b32.xlu0 %v655_v22, %s1041_s27 }
 0x162   : > { %v388_v38 = vpop.permute.xlu1 %387  ;;  %v390_v39 = vpop.permute.xlu0 %389 }
 0x163   : > { %v406_v60 = vadd.f32 %v388_v38, %v358_v58  ;;  %v407_v6 = vadd.f32 %v390_v39, %v359_v59 }
 0x164   : > { %711 = vrot.lane.b32.xlu1 %v656_v31, %s1041_s27  ;;  %737 = vrot.lane.b32.xlu0 %v1380_v5, %s1042_s28 }
 0x166   : > { %v392_v62 = vpop.permute.xlu1 %391  ;;  %v410_v8 = vpop.permute.xlu0 %409 }
 0x167   : > { %v408_v9 = vadd.f32 %v392_v62, %v360_v61  ;;  %v433_v52 = vadd.f32 %v410_v8, %v401_v34 }
 0x168   : > { %739 = vrot.lane.b32.xlu1 %v1390_v63, %s1042_s28  ;;  %741 = vrot.lane.b32.xlu0 %v1387_v7, %s1042_s28 }
 0x16a   : > { %v412_v4 = vpop.permute.xlu1 %411  ;;  %v414_v13 = vpop.permute.xlu0 %413 }
 0x16b   : > { %v434_v41 = vadd.f32 %v412_v4, %v402_v36  ;;  %v435_v14 = vadd.f32 %v414_v13, %v403_v37 }
 0x16c   : > { %743 = vrot.lane.b32.xlu1 %v1397_v12, %s1042_s28  ;;  %745 = vrot.lane.b32.xlu0 %v1400_v1, %s1042_s28 }
 0x16e   : > { %v416_v10 = vpop.permute.xlu1 %415  ;;  %v418_v16 = vpop.permute.xlu0 %417 }
 0x16f   : > { %v436_v11 = vadd.f32 %v416_v10, %v404_v0  ;;  %v437_v19 = vadd.f32 %v418_v16, %v405_v2 }
 0x170   : > { %747 = vrot.lane.b32.xlu1 %v1407_v3, %s1042_s28  ;;  %749 = vrot.lane.b32.xlu0 %v1410_v15, %s1042_s28 }
 0x172   : > { %v420_v21 = vpop.permute.xlu1 %419  ;;  %v422_v22 = vpop.permute.xlu0 %421 }
 0x173   : > { %v438_v17 = vadd.f32 %v420_v21, %v406_v60  ;;  %v439_v23 = vadd.f32 %v422_v22, %v407_v6 }
 0x174   : > { %751 = vrot.lane.b32.xlu1 %v1417_v20, %s1042_s28 }
 0x176   : > { %v424_v18 = vpop.permute.xlu1 %423  ;;  %v450_v25 = vpop.permute.xlu0 %449 }
 0x177   : > { %v440_v27 = vadd.f32 %v424_v18, %v408_v9  ;;  %v473_v30 = vadd.f32 %v450_v25, %v433_v52 }
 0x179   : > { %v497_v51 = vadd.f32 %v1292_v24, %v473_v30 }
 0x17a   : > { %v452_v31 = vpop.permute.xlu1 %451  ;;  %v454_v32 = vpop.permute.xlu0 %453 }
 0x17b   : > { %v474_v40 = vadd.f32 %v452_v31, %v434_v41  ;;  %v475_v42 = vadd.f32 %v454_v32, %v435_v14 }
 0x17d   : > { %v498_v54 = vadd.f32 %v1298_v28, %v474_v40  ;;  %v499_v56 = vadd.f32 %v1300_v29, %v475_v42 }
 0x17e   : > { %v456_v44 = vpop.permute.xlu1 %455  ;;  %v458_v45 = vpop.permute.xlu0 %457 }
 0x17f   : > { %v476_v46 = vadd.f32 %v456_v44, %v436_v11  ;;  %v477_v26 = vadd.f32 %v458_v45, %v437_v19 }
 0x181   : > { %v500_v38 = vadd.f32 %v1308_v33, %v476_v46  ;;  %v501_v39 = vadd.f32 %v1310_v43, %v477_v26 }
 0x182   : > { %v460_v34 = vpop.permute.xlu1 %459  ;;  %v462_v47 = vpop.permute.xlu0 %461 }
 0x183   : > { %v478_v35 = vadd.f32 %v460_v34, %v438_v17  ;;  %v479_v50 = vadd.f32 %v462_v47, %v439_v23 }
 0x185   : > { %v502_v62 = vadd.f32 %v1318_v48, %v478_v35  ;;  %v503_v8 = vadd.f32 %v1320_v49, %v479_v50 }
 0x186   : > { %v464_v36 = vpop.permute.xlu1 %463  ;;  %v522_v37 = vpop.permute.xlu0 %521 }
 0x187   : > { %v480_v57 = vadd.f32 %v464_v36, %v440_v27  ;;  %v545_v53 = vadd.f32 %v522_v37, %v497_v51 }
 0x189   : > { %v504_v4 = vadd.f32 %v1330_v55, %v480_v57 }
 0x18a   : > { %v524_v0 = vpop.permute.xlu1 %523  ;;  %v526_v2 = vpop.permute.xlu0 %525 }
 0x18b   : > { %v546_v58 = vadd.f32 %v524_v0, %v498_v54  ;;  %v547_v59 = vadd.f32 %v526_v2, %v499_v56 }
 0x18e   : > { %v528_v60 = vpop.permute.xlu1 %527  ;;  %v530_v6 = vpop.permute.xlu0 %529 }
 0x18f   : > { %v548_v61 = vadd.f32 %v528_v60, %v500_v38  ;;  %v549_v24 = vadd.f32 %v530_v6, %v501_v39 }
 0x192   : > { %v532_v9 = vpop.permute.xlu1 %531  ;;  %v534_v28 = vpop.permute.xlu0 %533 }
 0x193   : > { %v550_v52 = vadd.f32 %v532_v9, %v502_v62  ;;  %v551_v29 = vadd.f32 %v534_v28, %v503_v8 }
 0x196   : > { %v536_v13 = vpop.permute.xlu1 %535  ;;  %v554_v41 = vpop.permute.xlu0 %553 }
 0x197   : > { %v552_v14 = vadd.f32 %v536_v13, %v504_v4  ;;  %v577_v47 = vadd.f32 %v554_v41, %v545_v53 }
 0x19a   : > { %v556_v33 = vpop.permute.xlu1 %555  ;;  %v558_v10 = vpop.permute.xlu0 %557 }
 0x19b   : > { %v578_v36 = vadd.f32 %v556_v33, %v546_v58  ;;  %v579_v37 = vadd.f32 %v558_v10, %v547_v59 }
 0x19e   : > { %v560_v43 = vpop.permute.xlu1 %559  ;;  %v562_v16 = vpop.permute.xlu0 %561 }
 0x19f   : > { %v580_v0 = vadd.f32 %v560_v43, %v548_v61  ;;  %v581_v39 = vadd.f32 %v562_v16, %v549_v24 }
 0x1a2   : > { %v564_v11 = vpop.permute.xlu1 %563  ;;  %v566_v19 = vpop.permute.xlu0 %565 }
 0x1a3   : > { %v582_v28 = vadd.f32 %v564_v11, %v550_v52  ;;  %v583_v4 = vadd.f32 %v566_v19, %v551_v29 }
 0x1a6   : > { %v568_v21 = vpop.permute.xlu1 %567  ;;  %v594_v22 = vpop.permute.xlu0 %593 }
 0x1a7   : > { %v617_v35 = vadd.f32 %v594_v22, %v577_v47 }
 0x1a9   : > { %v641_v56 = vadd.f32 %v1380_v5, %v617_v35 }
 0x1aa   : > { %v596_v48 = vpop.permute.xlu1 %595  ;;  %v598_v17 = vpop.permute.xlu0 %597 }
 0x1ab   : > { %v618_v57 = vadd.f32 %v596_v48, %v578_v36  ;;  %v619_v54 = vadd.f32 %v598_v17, %v579_v37 }
 0x1ad   : > { %v642_v8 = vadd.f32 %v1390_v63, %v618_v57  ;;  %v643_v53 = vadd.f32 %v1387_v7, %v619_v54  ;;  %v584_v7 = vadd.f32 %v568_v21, %v552_v14 }
 0x1ae   : > { %v600_v49 = vpop.permute.xlu1 %599  ;;  %v602_v23 = vpop.permute.xlu0 %601 }
 0x1af   : > { %v620_v6 = vadd.f32 %v600_v49, %v580_v0  ;;  %v621_v62 = vadd.f32 %v602_v23, %v581_v39 }
 0x1b1   : > { %v644_v24 = vadd.f32 %v1397_v12, %v620_v6  ;;  %v645_v10 = vadd.f32 %v1400_v1, %v621_v62 }
 0x1b2   : > { %v604_v18 = vpop.permute.xlu1 %603  ;;  %v606_v25 = vpop.permute.xlu0 %605 }
 0x1b3   : > { %v622_v41 = vadd.f32 %v604_v18, %v582_v28  ;;  %v623_v33 = vadd.f32 %v606_v25, %v583_v4 }
 0x1b5   : > { %v646_v22 = vadd.f32 %v1407_v3, %v622_v41  ;;  %v647_v48 = vadd.f32 %v1410_v15, %v623_v33 }
 0x1b6   : > { %v608_v27 = vpop.permute.xlu1 %607  ;;  %v666_v30 = vpop.permute.xlu0 %665 }
 0x1b7   : > { %v689_v60 = vadd.f32 %v666_v30, %v641_v56  ;;  %v624_v1 = vadd.f32 %v608_v27, %v584_v7 }
 0x1b9   : > { %v648_v27 = vadd.f32 %v1417_v20, %v624_v1 }
 0x1ba   : > { %v668_v55 = vpop.permute.xlu1 %667  ;;  %v670_v31 = vpop.permute.xlu0 %669 }
 0x1bb   : > { %v690_v13 = vadd.f32 %v668_v55, %v642_v8  ;;  %v691_v5 = vadd.f32 %v670_v31, %v643_v53 }
 0x1be   : > { %v672_v32 = vpop.permute.xlu1 %671  ;;  %v674_v40 = vpop.permute.xlu0 %673 }
 0x1bf   : > { %v692_v16 = vadd.f32 %v672_v32, %v644_v24  ;;  %v693_v11 = vadd.f32 %v674_v40, %v645_v10 }
 0x1c2   : > { %v676_v42 = vpop.permute.xlu1 %675  ;;  %v678_v44 = vpop.permute.xlu0 %677 }
 0x1c3   : > { %v694_v23 = vadd.f32 %v676_v42, %v646_v22  ;;  %v695_v18 = vadd.f32 %v678_v44, %v647_v48 }
 0x1c6   : > { %v1429_v45 = vpop.permute.xlu1 %679  ;;  %v698_v46 = vpop.permute.xlu0 %697 }
 0x1c7   : > { %v721_v9 = vadd.f32 %v698_v46, %v689_v60  ;;  %v696_v32 = vadd.f32 %v1429_v45, %v648_v27 }
 0x1ca   : > { %v700_v26 = vpop.permute.xlu1 %699  ;;  %v702_v34 = vpop.permute.xlu0 %701 }
 0x1cb   : > { %v722_v43 = vadd.f32 %v700_v26, %v690_v13  ;;  %v723_v63 = vadd.f32 %v702_v34, %v691_v5 }
 0x1ce   : > { %v704_v50 = vpop.permute.xlu1 %703  ;;  %v706_v51 = vpop.permute.xlu0 %705 }
 0x1cf   : > { %v724_v17 = vadd.f32 %v704_v50, %v692_v16  ;;  %v725_v49 = vadd.f32 %v706_v51, %v693_v11 }
 0x1d2   : > { %v708_v2 = vpop.permute.xlu1 %707  ;;  %v710_v38 = vpop.permute.xlu0 %709 }
 0x1d3   : > { %v726_v30 = vadd.f32 %v708_v2, %v694_v23  ;;  %v727_v15 = vadd.f32 %v710_v38, %v695_v18 }
 0x1d6   : > { %v712_v58 = vpop.permute.xlu1 %711  ;;  %v738_v59 = vpop.permute.xlu0 %737 }
 0x1d7   : > { %v761_v61 = vadd.f32 %v738_v59, %v721_v9  ;;  %v728_v44 = vadd.f32 %v712_v58, %v696_v32 }
 0x1d9   : > { %770 = vst.msk [vmem:[%s1438_s29] sm:$0xff] %vm769_vm3, %v761_v61 }
 0x1da   : > { %v740_v52 = vpop.permute.xlu1 %739  ;;  %v742_v29 = vpop.permute.xlu0 %741 }
 0x1db   : > { %v762_v19 = vadd.f32 %v740_v52, %v722_v43  ;;  %v763_v12 = vadd.f32 %v742_v29, %v723_v63 }
 0x1dd   : > { %771 = vst.msk [vmem:[%s1438_s29 + $0x8] sm:$0xff] %vm769_vm3, %v762_v19  ;;  %772 = vst.msk [vmem:[%s1438_s29 + $0x10] sm:$0xff] %vm769_vm3, %v763_v12 }
 0x1de   : > { %v744_v14 = vpop.permute.xlu1 %743  ;;  %v746_v21 = vpop.permute.xlu0 %745 }
 0x1df   : > { %v764_v25 = vadd.f32 %v744_v14, %v724_v17  ;;  %v765_v3 = vadd.f32 %v746_v21, %v725_v49 }
 0x1e1   : > { %773 = vst.msk [vmem:[%s1438_s29 + $0x18] sm:$0xff] %vm769_vm3, %v764_v25  ;;  %774 = vst.msk [vmem:[%s1438_s29 + $0x20] sm:$0xff] %vm769_vm3, %v765_v3 }
 0x1e2   : > { %v748_v55 = vpop.permute.xlu1 %747  ;;  %v750_v31 = vpop.permute.xlu0 %749 }
 0x1e3   : > { %v766_v40 = vadd.f32 %v748_v55, %v726_v30  ;;  %v767_v42 = vadd.f32 %v750_v31, %v727_v15 }
 0x1e5   : > { %775 = vst.msk [vmem:[%s1438_s29 + $0x28] sm:$0xff] %vm769_vm3, %v766_v40  ;;  %776 = vst.msk [vmem:[%s1438_s29 + $0x30] sm:$0xff] %vm769_vm3, %v767_v42 }
 0x1e6   : > { %v752_v20 = vpop.permute.xlu1 %751 }
 0x1e7   : > { %v768_v45 = vadd.f32 %v752_v20, %v728_v44 }
 0x1e9   : > { %777 = vst.msk [vmem:[%s1438_s29 + $0x38] sm:$0xff] %vm769_vm3, %v768_v45 }
 0x1ea   : > { %982 = shalt.err (!%p979_p10)
}
 0x1eb   : > { %s983_s21 = scalar_lea.hbm %s1463_s11, 1024  ;;  %s987_s26 = scalar_lea.hbm %s1511_s1, 2048 }
 0x1ec   : > { %p984_p0 = scmp.ne.s32.totalorder %s1463_s11, %s983_s21  ;;  %p988_p1 = scmp.lt.s32.totalorder %s1463_s11, %s1511_s1 }
 0x1ed   : > { %p989_p3 = scmp.lt.s32.totalorder %s987_s26, %s983_s21 }
 0x1ee   : > { %p985_p2 = pnand %p984_p0, %p1520_p12 }
 0x1ef   : > { %p990_p6 = por %p989_p3, %p988_p1 }
 0x1f0   : > { %p986_p9 = pneg %p985_p2 }
 0x1f2   : > { %p991_p11 = pnand %p990_p6, %p986_p9 }
 0x1f4   : > { %994 = shalt.err (!%p991_p11)
}
 0x1f5   : > { %s1044_s25 = smov 128   ;;  %s1045_s27 = smov 8  }
 0x1f6   : > { %888 = dma.vmem_to_hbm [thread:$0]  (%p1520_p12), %s1465_s3, 1024, %s1463_s11, %s779_s10, %s1044_s25, %s1044_s25, %s1045_s27  }
 0x1f7 PF: > { %s808_s28 = sand.u32 1, %s1021_s6   ;;  %p1521_p13 = scmp.ne.s32.totalorder %s1517_s19, 0 }
 0x1f8   : > { %p1522_p4 = scmp.ge.s32.totalorder %s1033_s9, 2  ;;  %s809_s29 = scalar_lea.sflag [#allocation5], %s808_s28 }
 0x1fa   : > { %p895_p5 = pnand %p1522_p4, %p1521_p13 }
 0x1fc   : > { %p896_p7 = pneg %p895_p5 }
 0x1fe   : > { %1016 = dma.done.wait (%p896_p7), %s809_s29, 1024  }
 0x1ff   : > { %1018 = vsyncadd (%p896_p7), %s809_s29, 4294966272  ;;  %p14_p8 = scmp.ge.s32.totalorder %s1081_s12, 4   ;;  %s1523_s6 = smov %s1025_s7 }
 0x200   : > { %s1524_s7 = smov %s1029_s8  ;;  %s1525_s8 = smov %s1093_s15 }
 0x201   : > { %s1526_s9 = smov %s1081_s12  ;;  %16 = sbr.rel (!%p14_p8) target bundleno = 5 (0x5), region = 69 }
 0x206   :  { %814 = vsyncpa [#allocation4], 1 }
 0x207   :  { %816 = vsyncpa [#allocation4 + $0x1], 1 }
 0x208   :  { %817 = vsyncpa [#allocation5], 1 }
 0x209   :  { %819 = vsyncpa [#allocation5 + $0x1], 1 }

</bundles_post_ra>
